<compile_context>
chip_gen: v7x
topology: tpu7x:2x2x1
jax: 0.10.0
libtpu: 0.0.40
codegen_flags: <defaults>
</compile_context>

<pallas_src>
import jax
import jax.numpy as jnp
from jax.experimental import pallas as pl
from jax.experimental.pallas import tpu as pltpu

MIN_LOG_STD = -10.0
MAX_LOG_STD = 2.0


def _round_up(x, m):
    return ((x + m - 1) // m) * m


def _default_grid_steps():
    """2 grid steps on v7x (2 TensorCores / chip), 1 elsewhere."""
    try:
        kind = (jax.devices()[0].device_kind or "").lower()
        if "v7" in kind:
            return 2
    except Exception:  # pragma: no cover - conservative fallback
        pass
    return 1


def actor_kernel(state_ref, unc_ref,
                 w1s_ref, w1u_ref, b1_ref,
                 w2_ref, b2_ref,
                 whead_ref, bhead_ref,
                 mu_ref, std_ref):
    state = state_ref[...]                          # [BM, S] f32
    log_unc = jnp.log(unc_ref[...])                 # [BM, 1] f32

    # layer 1: relu(concat([state, log_unc]) @ W1 + b1)  (split-weight form)
    h = jnp.dot(state.astype(jnp.bfloat16), w1s_ref[...],
                preferred_element_type=jnp.float32)          # [BM, 384] f32 acc
    h = h + log_unc * w1u_ref[...] + b1_ref[...]             # broadcast MAD + bias
    h = jnp.maximum(h, 0.0)

    # layer 2
    h2 = jnp.dot(h.astype(jnp.bfloat16), w2_ref[...],
                 preferred_element_type=jnp.float32) + b2_ref[...]
    h2 = jnp.maximum(h2, 0.0)                                # [BM, 256]

    # fused heads: one [256, 2A] matmul; cols [:A] = mu, cols [A:] = log_std
    head = jnp.dot(h2.astype(jnp.bfloat16), whead_ref[...],
                   preferred_element_type=jnp.float32) + bhead_ref[...]
    A = mu_ref.shape[-1]
    mu_ref[...] = head[:, :A]
    std_ref[...] = jnp.exp(jnp.clip(head[:, A:], MIN_LOG_STD, MAX_LOG_STD))


def pack_actor_params(params):
    """One-time packing of raw f32 Linear params into kernel-ready form.

    Do this once at init / after each optimizer step — NOT per forward call.
    """
    return {
        "w1s": params["w1s"].astype(jnp.bfloat16),                 # [S, 384]
        "w1u": params["w1u"].astype(jnp.float32),                  # [1, 384]
        "b1": params["b1"].astype(jnp.float32),                    # [1, 384]
        "w2": params["w2"].astype(jnp.bfloat16),                   # [384, 256]
        "b2": params["b2"].astype(jnp.float32),                    # [1, 256]
        "w_head": jnp.concatenate([params["wmu"], params["wls"]],
                                  axis=1).astype(jnp.bfloat16),    # [256, 2A]
        "b_head": jnp.concatenate([params["bmu"], params["bls"]],
                                  axis=1).astype(jnp.float32),     # [1, 2A]
    }


def actor_forward(state, uncertain, packed, *, block_m=2048, grid_steps=None):
    """state: [B, S] f32, uncertain: [B, 1] f32 (>0). Returns (mu, std): [B, A].

    `packed` is the output of pack_actor_params(). block_m caps the batch tile
    (VMEM-safe up to ~2048 on every generation incl. v7x's 64 MiB). grid_steps
    defaults to 1 (single-TC parts) or 2 on v7x so both TensorCores get work.
    """
    B, S = state.shape
    A = packed["w_head"].shape[1] // 2

    if grid_steps is None:
        grid_steps = _default_grid_steps()
    # Don't split tiny batches into sub-8-row tiles.
    grid_steps = max(1, min(grid_steps, max(1, B // 8)))

    # Batch tile: as large as possible (fewest grid steps), sublane-aligned.
    # When B is a multiple of 8 (typical RL batches) this yields Bp == B and
    # the pad copies below disappear.
    BM = _round_up(pl.cdiv(B, grid_steps), 8)
    BM = min(BM, _round_up(block_m, 8))
    Bp = _round_up(B, BM)
    if Bp != B:
        state = jnp.pad(state, ((0, Bp - B), (0, 0)))
        # pad uncertain with 1.0 so log() of padded rows is 0 (no inf/nan)
        uncertain = jnp.pad(uncertain, ((0, Bp - B), (0, 0)),
                            constant_values=1.0)

    def batch_spec(cols):
        return pl.BlockSpec((BM, cols), lambda i: (i, 0))

    def const_spec(arr):
        return pl.BlockSpec(arr.shape, lambda i: (0, 0))    # resident across steps

    mu, std = pl.pallas_call(
        actor_kernel,
        out_shape=(jax.ShapeDtypeStruct((Bp, A), jnp.float32),
                   jax.ShapeDtypeStruct((Bp, A), jnp.float32)),
        grid=(Bp // BM,),
        in_specs=[
            batch_spec(S),                 # state
            batch_spec(1),                 # uncertain
            const_spec(packed["w1s"]),
            const_spec(packed["w1u"]),
            const_spec(packed["b1"]),
            const_spec(packed["w2"]),
            const_spec(packed["b2"]),
            const_spec(packed["w_head"]),
            const_spec(packed["b_head"]),
        ],
        out_specs=(batch_spec(A), batch_spec(A)),
        compiler_params=pltpu.CompilerParams(
            dimension_semantics=("parallel",),
            vmem_limit_bytes=32 * 1024 * 1024),
    )(state, uncertain,
      packed["w1s"], packed["w1u"], packed["b1"],
      packed["w2"], packed["b2"],
      packed["w_head"], packed["b_head"])

    if Bp != B:
        mu, std = mu[:B], std[:B]
    return mu, std


def init_actor_params(key, state_dim, action_dim):
    """Deterministic init mimicking torch.nn.Linear defaults:
    U(-1/sqrt(fan_in), 1/sqrt(fan_in)) for weight and bias."""
    def linear(k, fan_in, fan_out):
        kw, kb = jax.random.split(k)
        bound = 1.0 / jnp.sqrt(jnp.float32(fan_in))
        w = jax.random.uniform(kw, (fan_in, fan_out), jnp.float32, -bound, bound)
        b = jax.random.uniform(kb, (1, fan_out), jnp.float32, -bound, bound)
        return w, b

    k1, k2, k3, k4 = jax.random.split(key, 4)
    w1, b1 = linear(k1, state_dim + 1, 384)      # l1: (state_dim+1) -> 384
    w2, b2 = linear(k2, 384, 256)                # l2: 384 -> 256
    wmu, bmu = linear(k3, 256, action_dim)       # mu_head
    wls, bls = linear(k4, 256, action_dim)       # log_std_head
    return {
        "w1s": w1[:state_dim, :],                # state part of l1 weight
        "w1u": w1[state_dim:, :],                # log(uncertain) part of l1 weight
        "b1": b1,
        "w2": w2, "b2": b2,
        "wmu": wmu, "bmu": bmu,
        "wls": wls, "bls": bls,
    }


def actor_reference(state, uncertain, params):
    """Pure-JAX f32 reference of the PyTorch forward (SR=False path)."""
    su = jnp.concatenate([state, jnp.log(uncertain)], axis=-1)
    w1 = jnp.concatenate([params["w1s"], params["w1u"]], axis=0)
    a = jax.nn.relu(su @ w1 + params["b1"])
    a = jax.nn.relu(a @ params["w2"] + params["b2"])
    mu = a @ params["wmu"] + params["bmu"]
    log_std = jnp.clip(a @ params["wls"] + params["bls"], MIN_LOG_STD, MAX_LOG_STD)
    return mu, jnp.exp(log_std)


if __name__ == "__main__":
    # TODO(synk): SR=True branch (returns hidden activations) not implemented;
    # only the default SR=False path is covered.
    STATE_DIM = 8
    ACTION_DIM = 4
    BATCH = 2

    key = jax.random.PRNGKey(0)
    kp, ks, ku = jax.random.split(key, 3)

    params = init_actor_params(kp, STATE_DIM, ACTION_DIM)
    packed = pack_actor_params(params)           # one-time weight packing
    packed = jax.block_until_ready(packed)

    state = jax.random.normal(ks, (BATCH, STATE_DIM), jnp.float32)
    # uncertain must be strictly positive (log is taken)
    uncertain = jnp.exp(jax.random.normal(ku, (BATCH, 1), jnp.float32))

    mu, std = actor_forward(state, uncertain, packed)
    jax.block_until_ready((mu, std))

    mu_ref, std_ref = actor_reference(state, uncertain, params)
    assert mu.shape == (BATCH, ACTION_DIM) and std.shape == (BATCH, ACTION_DIM)
    # bf16 matmul operands (f32 accumulation) -> slightly looser tolerance
    assert jnp.allclose(mu, mu_ref, atol=2e-2, rtol=2e-2)
    assert jnp.allclose(std, std_ref, atol=2e-2, rtol=2e-2)

    # Exercise ragged batch + padding path (single big tile by default).
    BIG = 300
    ks2, ku2 = jax.random.split(jax.random.PRNGKey(1))
    state_b = jax.random.normal(ks2, (BIG, STATE_DIM), jnp.float32)
    unc_b = jnp.exp(jax.random.normal(ku2, (BIG, 1), jnp.float32))
    mu_b, std_b = actor_forward(state_b, unc_b, packed)
    jax.block_until_ready((mu_b, std_b))
    mu_br, std_br = actor_reference(state_b, unc_b, params)
    assert mu_b.shape == (BIG, ACTION_DIM) and std_b.shape == (BIG, ACTION_DIM)
    assert jnp.allclose(mu_b, mu_br, atol=2e-2, rtol=2e-2)
    assert jnp.allclose(std_b, std_br, atol=2e-2, rtol=2e-2)

    # Exercise the multi-step grid path (as used on v7x: 2 parallel steps).
    mu_2, std_2 = actor_forward(state_b, unc_b, packed, grid_steps=2)
    jax.block_until_ready((mu_2, std_2))
    assert jnp.allclose(mu_2, mu_br, atol=2e-2, rtol=2e-2)
    assert jnp.allclose(std_2, std_br, atol=2e-2, rtol=2e-2)

    print("KERNEL_OK")
</pallas_src>

<mosaic_0001>
module attributes {stable_mosaic.version = 11 : i64} {
  func.func @actor_kernel(%arg0: i32, %arg1: memref<8x8xf32, #tpu.memory_space<vmem>>, %arg2: memref<8x1xf32, #tpu.memory_space<vmem>>, %arg3: memref<8x384xbf16, #tpu.memory_space<vmem>>, %arg4: memref<1x384xf32, #tpu.memory_space<vmem>>, %arg5: memref<1x384xf32, #tpu.memory_space<vmem>>, %arg6: memref<384x256xbf16, #tpu.memory_space<vmem>>, %arg7: memref<1x256xf32, #tpu.memory_space<vmem>>, %arg8: memref<256x8xbf16, #tpu.memory_space<vmem>>, %arg9: memref<1x8xf32, #tpu.memory_space<vmem>>, %arg10: memref<8x4xf32, #tpu.memory_space<vmem>>, %arg11: memref<8x4xf32, #tpu.memory_space<vmem>>) attributes {dimension_semantics = [#tpu.dimension_semantics<parallel>], iteration_bounds = array<i64: 1>, scalar_prefetch = 0 : i64, scratch_operands = 0 : i64, tpu.core_type = #tpu.core_type<tc>, window_params = [{transform_indices = @transform_0, window_bounds = array<i64: 8, 8>}, {transform_indices = @transform_1, window_bounds = array<i64: 8, 1>}, {pipeline_mode = #tpu.pipeline_mode<synchronous>, transform_indices = @transform_2, window_bounds = array<i64: 8, 384>}, {pipeline_mode = #tpu.pipeline_mode<synchronous>, transform_indices = @transform_3, window_bounds = array<i64: 1, 384>}, {pipeline_mode = #tpu.pipeline_mode<synchronous>, transform_indices = @transform_4, window_bounds = array<i64: 1, 384>}, {pipeline_mode = #tpu.pipeline_mode<synchronous>, transform_indices = @transform_5, window_bounds = array<i64: 384, 256>}, {pipeline_mode = #tpu.pipeline_mode<synchronous>, transform_indices = @transform_6, window_bounds = array<i64: 1, 256>}, {pipeline_mode = #tpu.pipeline_mode<synchronous>, transform_indices = @transform_7, window_bounds = array<i64: 256, 8>}, {pipeline_mode = #tpu.pipeline_mode<synchronous>, transform_indices = @transform_8, window_bounds = array<i64: 1, 8>}, {transform_indices = @transform_9, window_bounds = array<i64: 8, 4>}, {transform_indices = @transform_10, window_bounds = array<i64: 8, 4>}]} {
    %c0 = arith.constant 0 : index
    %c0_0 = arith.constant 0 : index
    %0 = vector.load %arg1[%c0, %c0_0] : memref<8x8xf32, #tpu.memory_space<vmem>>, vector<8x8xf32>
    %c0_1 = arith.constant 0 : index
    %c0_2 = arith.constant 0 : index
    %1 = vector.load %arg2[%c0_1, %c0_2] : memref<8x1xf32, #tpu.memory_space<vmem>>, vector<8x1xf32>
    %2 = math.log %1 : vector<8x1xf32>
    %3 = arith.truncf %0 : vector<8x8xf32> to vector<8x8xbf16>
    %c0_3 = arith.constant 0 : index
    %c0_4 = arith.constant 0 : index
    %4 = vector.load %arg3[%c0_3, %c0_4] : memref<8x384xbf16, #tpu.memory_space<vmem>>, vector<8x384xbf16>
    %cst = arith.constant dense<0.000000e+00> : vector<8x384xf32>
    %5 = tpu.matmul %3, %4, %cst {dimension_numbers = #tpu.dot_dimension_numbers<[1], [0], [0], [1], [0, 0, 1, 1], [], []>} : vector<8x8xbf16>, vector<8x384xbf16>, vector<8x384xf32> -> vector<8x384xf32>
    %c0_5 = arith.constant 0 : index
    %c0_6 = arith.constant 0 : index
    %6 = vector.load %arg4[%c0_5, %c0_6] : memref<1x384xf32, #tpu.memory_space<vmem>>, vector<1x384xf32>
    %7 = vector.broadcast %2 : vector<8x1xf32> to vector<8x384xf32>
    %8 = vector.broadcast %6 : vector<1x384xf32> to vector<8x384xf32>
    %9 = arith.mulf %7, %8 : vector<8x384xf32>
    %10 = arith.addf %5, %9 : vector<8x384xf32>
    %c0_7 = arith.constant 0 : index
    %c0_8 = arith.constant 0 : index
    %11 = vector.load %arg5[%c0_7, %c0_8] : memref<1x384xf32, #tpu.memory_space<vmem>>, vector<1x384xf32>
    %12 = vector.broadcast %11 : vector<1x384xf32> to vector<8x384xf32>
    %13 = arith.addf %10, %12 : vector<8x384xf32>
    %cst_9 = arith.constant 0.000000e+00 : f32
    %14 = vector.broadcast %cst_9 : f32 to vector<8x384xf32>
    %15 = arith.maximumf %13, %14 : vector<8x384xf32>
    %16 = arith.truncf %15 : vector<8x384xf32> to vector<8x384xbf16>
    %c0_10 = arith.constant 0 : index
    %c0_11 = arith.constant 0 : index
    %17 = vector.load %arg6[%c0_10, %c0_11] : memref<384x256xbf16, #tpu.memory_space<vmem>>, vector<384x256xbf16>
    %cst_12 = arith.constant dense<0.000000e+00> : vector<8x256xf32>
    %18 = tpu.matmul %16, %17, %cst_12 {dimension_numbers = #tpu.dot_dimension_numbers<[1], [0], [0], [1], [0, 0, 1, 1], [], []>} : vector<8x384xbf16>, vector<384x256xbf16>, vector<8x256xf32> -> vector<8x256xf32>
    %c0_13 = arith.constant 0 : index
    %c0_14 = arith.constant 0 : index
    %19 = vector.load %arg7[%c0_13, %c0_14] : memref<1x256xf32, #tpu.memory_space<vmem>>, vector<1x256xf32>
    %20 = vector.broadcast %19 : vector<1x256xf32> to vector<8x256xf32>
    %21 = arith.addf %18, %20 : vector<8x256xf32>
    %cst_15 = arith.constant 0.000000e+00 : f32
    %22 = vector.broadcast %cst_15 : f32 to vector<8x256xf32>
    %23 = arith.maximumf %21, %22 : vector<8x256xf32>
    %24 = arith.truncf %23 : vector<8x256xf32> to vector<8x256xbf16>
    %c0_16 = arith.constant 0 : index
    %c0_17 = arith.constant 0 : index
    %25 = vector.load %arg8[%c0_16, %c0_17] : memref<256x8xbf16, #tpu.memory_space<vmem>>, vector<256x8xbf16>
    %cst_18 = arith.constant dense<0.000000e+00> : vector<8x8xf32>
    %26 = tpu.matmul %24, %25, %cst_18 {dimension_numbers = #tpu.dot_dimension_numbers<[1], [0], [0], [1], [0, 0, 1, 1], [], []>} : vector<8x256xbf16>, vector<256x8xbf16>, vector<8x8xf32> -> vector<8x8xf32>
    %c0_19 = arith.constant 0 : index
    %c0_20 = arith.constant 0 : index
    %27 = vector.load %arg9[%c0_19, %c0_20] : memref<1x8xf32, #tpu.memory_space<vmem>>, vector<1x8xf32>
    %28 = vector.broadcast %27 : vector<1x8xf32> to vector<8x8xf32>
    %29 = arith.addf %26, %28 : vector<8x8xf32>
    %30 = vector.extract_strided_slice %29 {offsets = [0, 0], sizes = [8, 4], strides = [1, 1]} : vector<8x8xf32> to vector<8x4xf32>
    %c0_21 = arith.constant 0 : index
    %c0_22 = arith.constant 0 : index
    %31 = vector.load %arg10[%c0_21, %c0_22] : memref<8x4xf32, #tpu.memory_space<vmem>>, vector<8x4xf32>
    tpu.vector_store %arg10[%c0_21, %c0_22], %30 {strides = array<i32>} : memref<8x4xf32, #tpu.memory_space<vmem>>, vector<8x4xf32>,
    %32 = vector.extract_strided_slice %29 {offsets = [0, 4], sizes = [8, 4], strides = [1, 1]} : vector<8x8xf32> to vector<8x4xf32>
    %cst_23 = arith.constant -1.000000e+01 : f32
    %cst_24 = arith.constant 2.000000e+00 : f32
    %33 = vector.broadcast %cst_23 : f32 to vector<8x4xf32>
    %34 = arith.maximumf %33, %32 : vector<8x4xf32>
    %35 = vector.broadcast %cst_24 : f32 to vector<8x4xf32>
    %36 = arith.minimumf %35, %34 : vector<8x4xf32>
    %37 = math.exp %36 : vector<8x4xf32>
    %c0_25 = arith.constant 0 : index
    %c0_26 = arith.constant 0 : index
    %38 = vector.load %arg11[%c0_25, %c0_26] : memref<8x4xf32, #tpu.memory_space<vmem>>, vector<8x4xf32>
    tpu.vector_store %arg11[%c0_25, %c0_26], %37 {strides = array<i32>} : memref<8x4xf32, #tpu.memory_space<vmem>>, vector<8x4xf32>,
    return
  }
  func.func @transform_0(%arg0: i32) -> (i32, i32) {
    %c0_i32 = arith.constant 0 : i32
    %c0_i32_0 = arith.constant 0 : i32
    return %arg0, %c0_i32 : i32, i32
  }
  func.func @transform_1(%arg0: i32) -> (i32, i32) {
    %c0_i32 = arith.constant 0 : i32
    %c0_i32_0 = arith.constant 0 : i32
    return %arg0, %c0_i32 : i32, i32
  }
  func.func @transform_2(%arg0: i32) -> (i32, i32) {
    %c0_i32 = arith.constant 0 : i32
    %c0_i32_0 = arith.constant 0 : i32
    %c0_i32_1 = arith.constant 0 : i32
    return %c0_i32, %c0_i32_0 : i32, i32
  }
  func.func @transform_3(%arg0: i32) -> (i32, i32) {
    %c0_i32 = arith.constant 0 : i32
    %c0_i32_0 = arith.constant 0 : i32
    %c0_i32_1 = arith.constant 0 : i32
    return %c0_i32, %c0_i32_0 : i32, i32
  }
  func.func @transform_4(%arg0: i32) -> (i32, i32) {
    %c0_i32 = arith.constant 0 : i32
    %c0_i32_0 = arith.constant 0 : i32
    %c0_i32_1 = arith.constant 0 : i32
    return %c0_i32, %c0_i32_0 : i32, i32
  }
  func.func @transform_5(%arg0: i32) -> (i32, i32) {
    %c0_i32 = arith.constant 0 : i32
    %c0_i32_0 = arith.constant 0 : i32
    %c0_i32_1 = arith.constant 0 : i32
    return %c0_i32, %c0_i32_0 : i32, i32
  }
  func.func @transform_6(%arg0: i32) -> (i32, i32) {
    %c0_i32 = arith.constant 0 : i32
    %c0_i32_0 = arith.constant 0 : i32
    %c0_i32_1 = arith.constant 0 : i32
    return %c0_i32, %c0_i32_0 : i32, i32
  }
  func.func @transform_7(%arg0: i32) -> (i32, i32) {
    %c0_i32 = arith.constant 0 : i32
    %c0_i32_0 = arith.constant 0 : i32
    %c0_i32_1 = arith.constant 0 : i32
    return %c0_i32, %c0_i32_0 : i32, i32
  }
  func.func @transform_8(%arg0: i32) -> (i32, i32) {
    %c0_i32 = arith.constant 0 : i32
    %c0_i32_0 = arith.constant 0 : i32
    %c0_i32_1 = arith.constant 0 : i32
    return %c0_i32, %c0_i32_0 : i32, i32
  }
  func.func @transform_9(%arg0: i32) -> (i32, i32) {
    %c0_i32 = arith.constant 0 : i32
    %c0_i32_0 = arith.constant 0 : i32
    return %arg0, %c0_i32 : i32, i32
  }
  func.func @transform_10(%arg0: i32) -> (i32, i32) {
    %c0_i32 = arith.constant 0 : i32
    %c0_i32_0 = arith.constant 0 : i32
    return %arg0, %c0_i32 : i32, i32
  }
}

</mosaic_0001>

<bundles_post_ra>
// kernel: tpu_custom_call.1
= control target key start
LH: loop header
LB: loop body
LE: loop exit
PB: predicated region body
PF: predicated region fallthrough
CT: control target
= control target key end

     0   :  { %16 = vsyncpa [#allocation3], 0  ;;  %s1023_s13 = smov [#allocation2]   ;;  %s1185_s0 = inlined_call_operand.vmem [shape: f32[8,8], index: 0, kind: input, shape index: {}]   ;;  %s1186_s1 = inlined_call_operand.vmem [shape: f32[8,1], index: 1, kind: input, shape index: {}]   ;;  %s1187_s2 = inlined_call_operand.vmem [shape: bf16[8,384], index: 2, kind: input, shape index: {}]   ;;  %s1188_s3 = inlined_call_operand.vmem [shape: f32[1,384], index: 3, kind: input, shape index: {}]   ;;  %s1189_s4 = inlined_call_operand.vmem [shape: f32[1,384], index: 4, kind: input, shape index: {}]   ;;  %s1190_s5 = inlined_call_operand.hbm [shape: bf16[384,256], index: 5, kind: input, shape index: {}]   ;;  %s1191_s6 = inlined_call_operand.vmem [shape: f32[1,256], index: 6, kind: input, shape index: {}]   ;;  %s1192_s7 = inlined_call_operand.vmem [shape: bf16[256,8], index: 7, kind: input, shape index: {}]   ;;  %s1193_s8 = inlined_call_operand.vmem [shape: f32[1,8], index: 8, kind: input, shape index: {}]   ;;  %s1194_s9 = inlined_call_operand.vmem [shape: f32[8,4], index: 9, kind: output, shape index: {0}]   ;;  %s1195_s10 = inlined_call_operand.vmem [shape: f32[8,4], index: 10, kind: output, shape index: {1}]  }
   0x1   :  { %s32_s14 = sshll.u32 %s1023_s13, 4  ;;  %s999_s17 = scalar_lea.hbm %s1190_s5, 6144  ;;  %s33_s14 = int_to_ptr.vmem [resolvable:$true] %s32_s14 }
   0x2   :  { %p1000_p0 = scmp.ne.s32.totalorder %s1190_s5, %s999_s17  ;;  %p1003_p1 = scmp.lt.u32.totalorder %s999_s17, %s1190_s5 }
   0x4   :  { %p1005_p2 = pnand %p1003_p1, %p1000_p0 }
   0x6   :  { %1008 = shalt.err (!%p1005_p2)
}
   0x7   :  { %s1009_s22 = scalar_lea.vmem %s33_s14, 6144  ;;  %p1014_p4 = scmp.lt.s32.totalorder %s33_s14, %s33_s14 }
   0x8   :  { %p1010_p3 = scmp.ne.s32.totalorder %s33_s14, %s1009_s22  ;;  %p1015_p5 = scmp.lt.s32.totalorder %s1009_s22, %s1009_s22 }
   0xa   :  { %p1016_p6 = por %p1015_p5, %p1014_p4 }
   0xc   :  { %p1017_p7 = pnand %p1016_p6, %p1010_p3 }
   0xe   :  { %1020 = shalt.err (!%p1017_p7)
}
   0xf   :  { %s1024_s23 = smov 128   ;;  %s1025_s24 = smov 8  }
  0x10   :  { %38 = dma.hbm_to_vmem [thread:$0]  %s1190_s5, 6144, %s33_s14, [#allocation3], %s1024_s23, %s1024_s23, %s1025_s24  }
  0x11   :  { %1021 = dma.done.wait [#allocation3], 6144  }
  0x12   :  { %1022 = vsyncadd [#allocation3], 4294961152  ;;  %v1026_v0 = vmov 0.0   ;;  %v1027_v1 = vmov 0   ;;  %vm1028_vm0 = vmmov 0   ;;  %vm93_vm1 = vcmask 1043456  }
  0x13   :  { %886 = vmatprep.subr.bf16.mxu1 %v1026_v0  ;;  %135 = vmatprep.mubr.bf16.mxu0 %v1027_v1  ;;  %v54_v2 = vld [vmem:[%s1187_s2] sm:$0xff]  ;;  %v906_v3 = vld [vmem:[%s1187_s2 + $0x8] ss:$0 sps:$4 sm:$0xff]   ;;  %vm89_vm2 = vcmask 64512   ;;  %v912_v13 = vld [vmem:[#allocation2 + $0x14] ss:$8 sps:$4 sm:$0xff]   ;;  %v63_v62 = vlaneseq }
  0x14   :  { %888 = vmatprep.mubr.msk.bf16.mxu1 %vm1028_vm0, %v1026_v0  ;;  %903 = vset.pattern.permute.xlu0 %v1027_v1  ;;  %v792_v4 = vcombine.high %v54_v2, %v54_v2  ;;  %v791_v5 = vcombine.low %v54_v2, %v54_v2  ;;  %v49_v6 = vld [vmem:[%s1185_s0] sm:$0xff]  ;;  %v101_v8 = vsel %vm93_vm1, %v906_v3, 0  ;;  %v910_v14 = vld [vmem:[#allocation2 + $0x10] ss:$8 sps:$4 sm:$0xff]   ;;  %v918_v18 = vld [vmem:[#allocation2 + $0x34] ss:$8 sps:$4 sm:$0xff]  }
  0x15   :  { %v50_v7 = vld [vmem:[%s1186_s1] sm:$0xff]  ;;  %v53_v9 = vpack.c.bf16 %v49_v6, %v49_v6  ;;  %887 = vmatpush3.bf16.msra.mxu1 %v101_v8  ;;  %v916_v22 = vld [vmem:[#allocation2 + $0x30] ss:$8 sps:$4 sm:$0xff]   ;;  %v939_v24 = vld [vmem:[#allocation2 + $0x114] ss:$8 sps:$4 sm:$0xff]   ;;  %v64_v63 = vshrl.u32 %v63_v62, 7 }
  0x16   :  { %995 = vlog2.f32 %v50_v7  ;;  %v909_v10 = vld [vmem:[#allocation2 + $0x4] ss:$8 sps:$4 sm:$0xff]   ;;  %794 = vmatprep.subr.msk.bf16.mxu0 %vm93_vm1, %v792_v4  ;;  %v95_v11 = vsel %vm93_vm1, %v791_v5, 0  ;;  %v907_v12 = vld [vmem:[#allocation2] ss:$8 sps:$4 sm:$0xff]   ;;  %vm771_vm3 = vcmask 31744  }
  0x17   :  { %104 = vmatpush1.bf16.msra.mxu0 %v95_v11  ;;  %v915_v15 = vld [vmem:[#allocation2 + $0x24] ss:$8 sps:$4 sm:$0xff]   ;;  %v913_v16 = vld [vmem:[#allocation2 + $0x20] ss:$8 sps:$4 sm:$0xff]   ;;  %v937_v23 = vld [vmem:[#allocation2 + $0x110] ss:$8 sps:$4 sm:$0xff]  }
  0x18   :  { %510 = vmatprep.subr.bf16.mxu0 %v909_v10  ;;  %889 = vmatmul.mubr.msk.bf16.vlgmr.msra.gmra.mrb[0].mxu1 %vm89_vm2, %v53_v9  ;;  %v931_v20 = vld [vmem:[#allocation2 + $0x100] ss:$8 sps:$4 sm:$0xff]   ;;  %v933_v21 = vld [vmem:[#allocation2 + $0x104] ss:$8 sps:$4 sm:$0xff]   ;;  %v924_v29 = vld [vmem:[#allocation2 + $0x54] ss:$8 sps:$4 sm:$0xff]  }
  0x19   :  { %583 = vmatprep.mubr.bf16.mxu1 %v1027_v1  ;;  %551 = vmatprep.subr.bf16.mxu1 %v933_v21  ;;  %v921_v25 = vld [vmem:[#allocation2 + $0x44] ss:$8 sps:$4 sm:$0xff]   ;;  %v919_v27 = vld [vmem:[#allocation2 + $0x40] ss:$8 sps:$4 sm:$0xff]   ;;  %v951_v30 = vld [vmem:[#allocation2 + $0x134] ss:$8 sps:$4 sm:$0xff]  }
  0x1a   :  { %795 = vmatmul.mubr.msk.bf16.vlgmr.msra.gmra.mrb[0].mxu0 %vm89_vm2, %v53_v9  ;;  %552 = vmatpush1.bf16.msra.mxu1 %v931_v20  ;;  %v945_v26 = vld [vmem:[#allocation2 + $0x124] ss:$8 sps:$4 sm:$0xff]   ;;  %v943_v28 = vld [vmem:[#allocation2 + $0x120] ss:$8 sps:$4 sm:$0xff]   ;;  %v922_v31 = vld [vmem:[#allocation2 + $0x50] ss:$8 sps:$4 sm:$0xff]  }
  0x1b   :  { %511 = vmatpush1.bf16.msra.mxu0 %v907_v12  ;;  %553 = vmatprep.subr.bf16.mxu1 %v939_v24  ;;  %v949_v32 = vld [vmem:[#allocation2 + $0x130] ss:$8 sps:$4 sm:$0xff]   ;;  %v927_v33 = vld [vmem:[#allocation2 + $0x64] ss:$8 sps:$4 sm:$0xff]   ;;  %v925_v35 = vld [vmem:[#allocation2 + $0x60] ss:$8 sps:$4 sm:$0xff]  }
  0x1c   :  { %512 = vmatprep.subr.bf16.mxu0 %v912_v13  ;;  %v957_v34 = vld [vmem:[#allocation2 + $0x144] ss:$8 sps:$4 sm:$0xff]   ;;  %v930_v36 = vld [vmem:[#allocation2 + $0x74] ss:$8 sps:$4 sm:$0xff]   ;;  %v955_v37 = vld [vmem:[#allocation2 + $0x140] ss:$8 sps:$4 sm:$0xff]  }
  0x1d   :  { %v963_v38 = vld [vmem:[#allocation2 + $0x154] ss:$8 sps:$4 sm:$0xff]   ;;  %v928_v39 = vld [vmem:[#allocation2 + $0x70] ss:$8 sps:$4 sm:$0xff]   ;;  %v936_v41 = vld [vmem:[#allocation2 + $0x84] ss:$8 sps:$4 sm:$0xff]  }
  0x1e   :  { %554 = vmatpush1.bf16.msra.mxu1 %v937_v23  ;;  %v961_v40 = vld [vmem:[#allocation2 + $0x150] ss:$8 sps:$4 sm:$0xff]   ;;  %v934_v42 = vld [vmem:[#allocation2 + $0x80] ss:$8 sps:$4 sm:$0xff]   ;;  %v942_v43 = vld [vmem:[#allocation2 + $0x94] ss:$8 sps:$4 sm:$0xff]  }
  0x1f   :  { %513 = vmatpush1.bf16.msra.mxu0 %v910_v14  ;;  %555 = vmatprep.subr.bf16.mxu1 %v945_v26  ;;  %v940_v44 = vld [vmem:[#allocation2 + $0x90] ss:$8 sps:$4 sm:$0xff]   ;;  %v948_v45 = vld [vmem:[#allocation2 + $0xa4] ss:$8 sps:$4 sm:$0xff]   ;;  %v946_v46 = vld [vmem:[#allocation2 + $0xa0] ss:$8 sps:$4 sm:$0xff]  }
  0x20   :  { %v996_v17 = vpop.eup %995  ;;  %514 = vmatprep.subr.bf16.mxu0 %v915_v15  ;;  %v954_v47 = vld [vmem:[#allocation2 + $0xb4] ss:$8 sps:$4 sm:$0xff]   ;;  %v952_v48 = vld [vmem:[#allocation2 + $0xb0] ss:$8 sps:$4 sm:$0xff]   ;;  %v960_v49 = vld [vmem:[#allocation2 + $0xc4] ss:$8 sps:$4 sm:$0xff]  }
  0x21   :  { %v52_v19 = vmul.f32 0.6931472, %v996_v17  ;;  %v958_v50 = vld [vmem:[#allocation2 + $0xc0] ss:$8 sps:$4 sm:$0xff]   ;;  %v966_v51 = vld [vmem:[#allocation2 + $0xd4] ss:$8 sps:$4 sm:$0xff]  }
  0x22   :  { %556 = vmatpush1.bf16.msra.mxu1 %v943_v28  ;;  %v964_v52 = vld [vmem:[#allocation2 + $0xd0] ss:$8 sps:$4 sm:$0xff]   ;;  %v969_v53 = vld [vmem:[#allocation2 + $0x164] ss:$8 sps:$4 sm:$0xff]   ;;  %v967_v54 = vld [vmem:[#allocation2 + $0x160] ss:$8 sps:$4 sm:$0xff]  }
  0x23   :  { %59 = vperm.xlu0 %903, %v52_v19   ;;  %515 = vmatpush1.bf16.msra.mxu0 %v913_v16  ;;  %v972_v55 = vld [vmem:[#allocation2 + $0xe4] ss:$8 sps:$4 sm:$0xff]   ;;  %v970_v56 = vld [vmem:[#allocation2 + $0xe0] ss:$8 sps:$4 sm:$0xff]   ;;  %v975_v57 = vld [vmem:[#allocation2 + $0x174] ss:$8 sps:$4 sm:$0xff]  }
  0x24   :  { %516 = vmatprep.subr.bf16.mxu0 %v918_v18  ;;  %557 = vmatprep.subr.bf16.mxu1 %v951_v30  ;;  %v973_v58 = vld [vmem:[#allocation2 + $0x170] ss:$8 sps:$4 sm:$0xff]   ;;  %v978_v59 = vld [vmem:[#allocation2 + $0xf4] ss:$8 sps:$4 sm:$0xff]   ;;  %v979_v61 = vld [vmem:[%s1192_s7 + $0x40] sm:$0xff]   ;;  %v73_v0 = vsub.s32 2, %v64_v63 }
  0x25   :  { %v976_v60 = vld [vmem:[#allocation2 + $0xf0] ss:$8 sps:$4 sm:$0xff]   ;;  %v56_v1 = vld [vmem:[%s1188_s3] sm:$0x7]  ;;  %v1115_v2 = vsub.s32 0, %v64_v63  ;;  %v1117_v3 = vsub.s32 1, %v64_v63 }
  0x26   :  { %558 = vmatpush1.bf16.msra.mxu1 %v949_v32  ;;  %v74_v4 = vrot.slane %v56_v1, %v73_v0  ;;  %v184_v8 = vld [vmem:[%s1189_s4] sm:$0x7]  ;;  %s1029_s23 = smov 124  }
  0x27   :  { %517 = vmatpush1.bf16.msra.mxu0 %v916_v22  ;;  %559 = vmatprep.subr.bf16.mxu1 %v957_v34  ;;  %v66_v6 = vrot.slane %v56_v1, %v1115_v2  ;;  %v70_v7 = vrot.slane %v56_v1, %v1117_v3  ;;  %v197_v11 = vrot.slane %v184_v8, %v73_v0  ;;  %v981_v34 = vld [vmem:[%s1192_s7 + $0x48] sm:$0xff]  }
  0x28   :  { %518 = vmatprep.subr.bf16.mxu0 %v921_v25  ;;  %v189_v13 = vrot.slane %v184_v8, %v1115_v2  ;;  %v193_v17 = vrot.slane %v184_v8, %v1117_v3 }
  0x2a   :  { %560 = vmatpush1.bf16.msra.mxu1 %v955_v37  ;;  %v982_v37 = vld [vmem:[%s1192_s7 + $0x8] sm:$0xff]  }
  0x2b   :  { %519 = vmatpush1.bf16.msra.mxu0 %v919_v27  ;;  %561 = vmatprep.subr.bf16.mxu1 %v963_v38  ;;  %v983_v38 = vld [vmem:[%s1192_s7 + $0x50] sm:$0xff]  }
  0x2c   :  { %520 = vmatprep.subr.bf16.mxu0 %v924_v29 }
  0x2e   :  { %562 = vmatpush1.bf16.msra.mxu1 %v961_v40  ;;  %v985_v40 = vld [vmem:[%s1192_s7 + $0x58] sm:$0xff]  }
  0x2f   :  { %521 = vmatpush1.bf16.msra.mxu0 %v922_v31  ;;  %563 = vmatprep.subr.bf16.mxu1 %v969_v53  ;;  %v980_v31 = vld [vmem:[%s1192_s7] sm:$0xff]  }
  0x30   :  { %522 = vmatprep.subr.bf16.mxu0 %v927_v33 }
  0x32   :  { %564 = vmatpush1.bf16.msra.mxu1 %v967_v54 }
  0x33   :  { %523 = vmatpush1.bf16.msra.mxu0 %v925_v35  ;;  %565 = vmatprep.subr.bf16.mxu1 %v975_v57 }
  0x34   :  { %524 = vmatprep.subr.bf16.mxu0 %v930_v36 }
  0x36   :  { %566 = vmatpush1.bf16.msra.mxu1 %v973_v58 }
  0x37   :  { %525 = vmatpush1.bf16.msra.mxu0 %v928_v39  ;;  %864 = vmatprep.subr.bf16.mxu1 %v979_v61  ;;  %v984_v39 = vld [vmem:[%s1192_s7 + $0x10] sm:$0xff]  }
  0x38   :  { %526 = vmatprep.subr.bf16.mxu0 %v936_v41  ;;  %v986_v41 = vld [vmem:[%s1192_s7 + $0x18] sm:$0xff]  }
  0x3b   :  { %527 = vmatpush1.bf16.msra.mxu0 %v934_v42  ;;  %v987_v42 = vld [vmem:[%s1192_s7 + $0x60] sm:$0xff]  }
  0x3c   :  { %528 = vmatprep.subr.bf16.mxu0 %v942_v43  ;;  %v988_v43 = vld [vmem:[%s1192_s7 + $0x20] sm:$0xff]  }
  0x3f   :  { %529 = vmatpush1.bf16.msra.mxu0 %v940_v44  ;;  %v989_v44 = vld [vmem:[%s1192_s7 + $0x68] sm:$0xff]  }
  0x40   :  { %530 = vmatprep.subr.bf16.mxu0 %v948_v45  ;;  %v990_v45 = vld [vmem:[%s1192_s7 + $0x28] sm:$0xff]  }
  0x43   :  { %531 = vmatpush1.bf16.msra.mxu0 %v946_v46  ;;  %v991_v46 = vld [vmem:[%s1192_s7 + $0x70] sm:$0xff]  }
  0x44   :  { %532 = vmatprep.subr.bf16.mxu0 %v954_v47  ;;  %v992_v47 = vld [vmem:[%s1192_s7 + $0x30] sm:$0xff]  }
  0x47   :  { %533 = vmatpush1.bf16.msra.mxu0 %v952_v48  ;;  %v993_v48 = vld [vmem:[%s1192_s7 + $0x78] sm:$0xff]  }
  0x48   :  { %534 = vmatprep.subr.bf16.mxu0 %v960_v49  ;;  %v994_v49 = vld [vmem:[%s1192_s7 + $0x38] sm:$0xff]  }
  0x4b   :  { %535 = vmatpush1.bf16.msra.mxu0 %v958_v50  ;;  %v258_v50 = vld [vmem:[%s1191_s6] sm:$0x3] }
  0x4c   :  { %536 = vmatprep.subr.bf16.mxu0 %v966_v51  ;;  %v267_v54 = vrot.slane %v258_v50, %v1117_v3  ;;  %v845_v3 = vld [vmem:[%s1193_s8] ss:$0 sm:$0xff] }
  0x4f   :  { %537 = vmatpush1.bf16.msra.mxu0 %v964_v52  ;;  %v263_v52 = vrot.slane %v258_v50, %v1115_v2 }
  0x50   :  { %538 = vmatprep.subr.bf16.mxu0 %v972_v55 }
  0x53   :  { %539 = vmatpush1.bf16.msra.mxu0 %v970_v56 }
  0x54   :  { %540 = vmatprep.subr.bf16.mxu0 %v978_v59 }
  0x57   :  { %541 = vmatpush1.bf16.msra.mxu0 %v976_v60 }
  0xa2   :  { %v60_v5 = vpop.permute.xlu0 %59 }
  0xa3   :  { %v80_v9 = vmul.f32 %v74_v4, %v60_v5  ;;  %v78_v10 = vmul.f32 %v66_v6, %v60_v5  ;;  %v79_v12 = vmul.f32 %v70_v7, %v60_v5 }
  0xeb   :  { %v178_v14 = vpop.f32.mrb[0].mxu1 }
  0xec   :  { %v179_v16 = vadd.f32 %v178_v14, %v80_v9  ;;  %v890_v18 = vpop.f32.mrb[1].mxu1 }
  0xed   :  { %v137_v15 = vpop.f32.mrb[0].mxu0  ;;  %v181_v21 = vpop.f32.mrb[2].mxu1 }
  0xee   :  { %v138_v19 = vadd.f32 %v137_v15, %v78_v10  ;;  %v139_v20 = vpop.f32.mrb[1].mxu0  ;;  %v203_v22 = vadd.f32 %v197_v11, %v179_v16  ;;  %v891_v25 = vpop.f32.mrb[3].mxu1 }
  0xef   :  { %v140_v23 = vadd.f32 %v139_v20, %v79_v12  ;;  %v141_v24 = vpop.f32.mrb[2].mxu0 }
  0xf0   :  { %v201_v26 = vadd.f32 %v189_v13, %v138_v19  ;;  %v142_v27 = vpop.f32.mrb[3].mxu0  ;;  %v206_v28 = vmax.f32 %v203_v22, 0.0 }
  0xf1   :  { %v202_v29 = vadd.f32 %v193_v17, %v140_v23 }
  0xf2   :  { %v204_v30 = vmax.f32 %v201_v26, 0.0  ;;  %v209_v32 = vpack.c.bf16 %v206_v28, %v206_v28 }
  0xf3   :  { %v205_v33 = vmax.f32 %v202_v29, 0.0 }
  0xf4   :  { %584 = vmatmul.mubr.bf16.vlgmr.msra.gmra.mrb[4].mxu1 %v209_v32  ;;  %v207_v36 = vpack.c.bf16 %v204_v30, %v204_v30 }
  0xf5   :  { %v208_v35 = vpack.c.bf16 %v205_v33, %v205_v33  ;;  %865 = vmatpush3.bf16.msra.mxu1 %v980_v31 }
  0xf6   :  { %866 = vmatprep.subr.bf16.mxu1 %v981_v34 }
  0xf7   :  { %542 = vmatprep.mubr.bf16.mxu0 %v208_v35 }
  0xf8   :  { %543 = vmatmul.mubr.bf16.vlgmr.msra.gmra.mrb[4].mxu0 %v207_v36 }
  0xf9   :  { %867 = vmatpush3.bf16.msra.mxu1 %v982_v37 }
  0xfa   :  { %868 = vmatprep.subr.bf16.mxu1 %v983_v38 }
  0xfd   :  { %869 = vmatpush3.bf16.msra.mxu1 %v984_v39 }
  0xfe   :  { %870 = vmatprep.subr.bf16.mxu1 %v985_v40 }
 0x101   :  { %871 = vmatpush3.bf16.msra.mxu1 %v986_v41 }
 0x102   :  { %872 = vmatprep.subr.bf16.mxu1 %v987_v42 }
 0x105   :  { %873 = vmatpush3.bf16.msra.mxu1 %v988_v43 }
 0x106   :  { %874 = vmatprep.subr.bf16.mxu1 %v989_v44 }
 0x109   :  { %875 = vmatpush3.bf16.msra.mxu1 %v990_v45 }
 0x10a   :  { %876 = vmatprep.subr.bf16.mxu1 %v991_v46 }
 0x10d   :  { %877 = vmatpush3.bf16.msra.mxu1 %v992_v47 }
 0x10e   :  { %878 = vmatprep.subr.bf16.mxu1 %v993_v48 }
 0x111   :  { %879 = vmatpush3.bf16.msra.mxu1 %v994_v49 }
 0x1c7   :  { %v585_v51 = vpop.f32.mrb[4].mxu1 }
 0x1c8   :  { %v587_v53 = vpop.f32.mrb[5].mxu1 }
 0x1c9   :  { %v589_v55 = vpop.f32.mrb[6].mxu1 }
 0x1ca   :  { %v590_v57 = vpop.f32.mrb[7].mxu1 }
 0x1cb   :  { %v544_v56 = vpop.f32.mrb[4].mxu0 }
 0x1cc   :  { %v545_v58 = vadd.f32 %v544_v56, %v263_v52  ;;  %v546_v59 = vpop.f32.mrb[5].mxu0 }
 0x1cd   :  { %v547_v60 = vadd.f32 %v546_v59, %v267_v54  ;;  %v548_v61 = vpop.f32.mrb[6].mxu0 }
 0x1ce   :  { %v586_v62 = vadd.f32 %v585_v51, %v545_v58  ;;  %v549_v63 = vpop.f32.mrb[7].mxu0 }
 0x1cf   :  { %v588_v0 = vadd.f32 %v587_v53, %v547_v60 }
 0x1d0   :  { %v592_v1 = vmax.f32 %v586_v62, 0.0 }
 0x1d1   :  { %v593_v4 = vmax.f32 %v588_v0, 0.0 }
 0x1d2   :  { %v594_v6 = vpack.c.bf16 %v592_v1, %v592_v1 }
 0x1d3   :  { %v595_v5 = vpack.c.bf16 %v593_v4, %v593_v4 }
 0x1d5   :  { %763 = vmatprep.mubr.bf16.mxu1 %v595_v5 }
 0x1d6   :  { %764 = vmatmul.mubr.bf16.vlgmr.msra.gmra.mrb[8].mxu1 %v594_v6 }
 0x2a9   :  { %v880_v2 = vpop.f32.mrb[8].mxu1 }
 0x2aa   :  { %v881_v7 = vpop.f32.mrb[9].mxu1 }
 0x2ab   :  { %v882_v8 = vadd.f32 %v881_v7, %v880_v2  ;;  %v883_v9 = vpop.f32.mrb[10].mxu1 }
 0x2ac   :  { %v884_v10 = vpop.f32.mrb[11].mxu1 }
 0x2ad   :  { %v766_v11 = vadd.f32 %v882_v8, %v845_v3 }
 0x2af   :  { %v773_v12 = vmax.f32 %v766_v11, -10.0  ;;  %772 = vst.msk [vmem:[%s1194_s9] sm:$0xff] %vm771_vm3, %v766_v11 }
 0x2b1   :  { %v774_v13 = vmin.f32 %v773_v12, 2.0 }
 0x2b3   :  { %v775_v14 = vmul.f32 1.442695, %v774_v13 }
 0x2b5   :  { %997 = vpow2.f32 %v775_v14 }
 0x2bf   :  { %v998_v15 = vpop.eup %997 }
 0x2c0   :  { %778 = vrot.lane.b32.xlu0 %v998_v15, %s1029_s23 }
 0x332   :  { %v779_v16 = vpop.permute.xlu0 %778 }
 0x333   :  { %781 = vst.msk [vmem:[%s1195_s10] sm:$0xff] %vm771_vm3, %v779_v16 }
 0x334   :  { %790 = vsyncpa [#allocation3], 1 }

</bundles_post_ra>
